<compile_context>
chip_gen: v7x
topology: tpu7x:2x2x1
jax: 0.10.0
libtpu: 0.0.40
codegen_flags: <defaults>
</compile_context>

<pallas_src>
import math
import functools

import jax
import jax.numpy as jnp
from jax.experimental import pallas as pl
from jax.experimental.pallas import tpu as pltpu


# --------------------------------------------------------------------------------------
# Kernel 1: fused-QKV attention + residual + partial BN1 stats, one batch element / step
# --------------------------------------------------------------------------------------
def _attn_kernel(H, d_head, cdt,
                 x_ref, wqkv_ref, bqkv_ref, wo_ref, bo_ref,
                 x1_ref, stat_ref):
    xf = x_ref[0].astype(jnp.float32)                       # (L, D)
    L, D = xf.shape

    # Fused QKV projection: single big-N matmul, f32 accumulation.
    qkv = jnp.dot(xf.astype(cdt), wqkv_ref[...].astype(cdt),
                  preferred_element_type=jnp.float32) + bqkv_ref[...]   # (L, 3D)

    scale = 1.0 / math.sqrt(d_head)
    acc = jnp.zeros((L, D), jnp.float32)

    # Heads unrolled at trace time (H is small); batch handled by the grid.
    for h in range(H):
        q_h = qkv[:, h * d_head:(h + 1) * d_head]                        # (L, dh)
        k_h = qkv[:, D + h * d_head:D + (h + 1) * d_head]                # (L, dh)
        v_h = qkv[:, 2 * D + h * d_head:2 * D + (h + 1) * d_head]        # (L, dh)

        # scores = q_h @ k_h^T expressed via dimension_numbers (no materialized .T)
        s = jax.lax.dot_general(q_h.astype(cdt), k_h.astype(cdt),
                                (((1,), (1,)), ((), ())),
                                preferred_element_type=jnp.float32) * scale   # (L, L)
        s = s - jnp.max(s, axis=-1, keepdims=True)
        e = jnp.exp(s)
        p = e * pl.reciprocal(jnp.sum(e, axis=-1, keepdims=True), approx=True)

        ctx = jnp.dot(p.astype(cdt), v_h.astype(cdt),
                      preferred_element_type=jnp.float32)                # (L, dh)
        # Per-head slice of the output projection, accumulated directly into (L, D):
        # avoids any concatenate/stack relayout of the per-head contexts.
        acc = acc + jnp.dot(ctx.astype(cdt), wo_ref[h].astype(cdt),
                            preferred_element_type=jnp.float32)          # (L, D)

    x1 = xf + acc + bo_ref[...]                              # residual + out-proj bias
    x1_ref[0] = x1.astype(x1_ref.dtype)

    # Per-batch partial BatchNorm stats: [row-sum; row-sum-of-squares]  -> (2, D)
    stat_ref[0] = jnp.concatenate(
        [jnp.sum(x1, axis=0, keepdims=True),
         jnp.sum(x1 * x1, axis=0, keepdims=True)], axis=0)


# --------------------------------------------------------------------------------------
# Kernel 2: BN1 (global stats) + FFN(GELU) + residual + partial BN2 stats, row-tiled
# --------------------------------------------------------------------------------------
def _bn_ffn_kernel(n_rows, eps, cdt,
                   x1_ref, stat1_ref, g1_ref, be1_ref,
                   w1_ref, b1_ref, w2_ref, b2_ref,
                   x2_ref, stat2_ref):
    x1 = x1_ref[...].astype(jnp.float32)                     # (TM, D)

    # Finalize global BN1 stats from per-batch partials (tiny: (B, 2, D) -> (2, D)).
    tot = jnp.sum(stat1_ref[...].astype(jnp.float32), axis=0)            # (2, D)
    mean = tot[0:1, :] * (1.0 / n_rows)                                  # (1, D)
    var = tot[1:2, :] * (1.0 / n_rows) - mean * mean
    rstd = jax.lax.rsqrt(var + eps)
    x1n = (x1 - mean) * (rstd * g1_ref[...]) + be1_ref[...]

    # Position-wise FFN with exact (erf) GELU, bf16-in / f32-acc matmuls.
    hmid = jnp.dot(x1n.astype(cdt), w1_ref[...].astype(cdt),
                   preferred_element_type=jnp.float32) + b1_ref[...]     # (TM, F)
    hact = 0.5 * hmid * (1.0 + jax.lax.erf(hmid * (1.0 / math.sqrt(2.0))))
    ff = jnp.dot(hact.astype(cdt), w2_ref[...].astype(cdt),
                 preferred_element_type=jnp.float32) + b2_ref[...]       # (TM, D)

    x2 = x1n + ff
    x2_ref[...] = x2.astype(x2_ref.dtype)

    # Per-tile partial BN2 stats (one-pass sum / sum-of-squares).
    stat2_ref[0] = jnp.concatenate(
        [jnp.sum(x2, axis=0, keepdims=True),
         jnp.sum(x2 * x2, axis=0, keepdims=True)], axis=0)


# --------------------------------------------------------------------------------------
# Kernel 3: BN2 apply (global stats), row-tiled
# --------------------------------------------------------------------------------------
def _bn_apply_kernel(n_rows, eps,
                     x2_ref, stat2_ref, g2_ref, be2_ref, o_ref):
    x2 = x2_ref[...].astype(jnp.float32)                     # (TM, D)
    tot = jnp.sum(stat2_ref[...].astype(jnp.float32), axis=0)            # (2, D)
    mean = tot[0:1, :] * (1.0 / n_rows)
    var = tot[1:2, :] * (1.0 / n_rows) - mean * mean
    rstd = jax.lax.rsqrt(var + eps)
    o_ref[...] = ((x2 - mean) * (rstd * g2_ref[...]) + be2_ref[...]).astype(o_ref.dtype)


# --------------------------------------------------------------------------------------
# Wrapper
# --------------------------------------------------------------------------------------
def encoder_layer_pallas(x, params, *, n_heads, eps=1e-5, tile_rows=256,
                         compute_dtype=jnp.bfloat16, vmem_limit_bytes=None):
    (wq, bq, wk, bk, wv, bv, wo, bo, g1, be1, w1, b1, w2, b2, g2, be2) = params
    B, L, D = x.shape
    assert D % n_heads == 0
    H = n_heads
    dh = D // H
    F = w1.shape[1]
    N = B * L

    # Fuse QKV weights/biases; split Wo per head so the kernel never lane-slices it.
    wqkv = jnp.concatenate([wq, wk, wv], axis=1)             # (D, 3D)
    bqkv = jnp.concatenate([bq, bk, bv], axis=1)             # (1, 3D)
    wo_h = wo.reshape(H, dh, D)                              # (H, dh, D)

    # Row tile for the FFN/BN kernels (must be a multiple of 8 that divides B*L).
    if tile_rows < N and N % tile_rows == 0 and tile_rows % 8 == 0:
        tm = tile_rows
    else:
        tm = N
    nt = N // tm

    cparams = pltpu.CompilerParams(dimension_semantics=("parallel",),
                                   vmem_limit_bytes=vmem_limit_bytes)

    # ---------------- Kernel 1: attention + residual + partial BN1 stats ----------------
    k1_flops = 2 * B * L * D * 3 * D + 4 * B * H * L * L * dh + 2 * B * L * D * D + 10 * B * L * D
    k1_bytes = 4 * (2 * B * L * D + 3 * D * D + 3 * D + H * dh * D + D + 2 * B * D)
    x1, stat1 = pl.pallas_call(
        functools.partial(_attn_kernel, H, dh, compute_dtype),
        grid=(B,),
        in_specs=[
            pl.BlockSpec((1, L, D), lambda b: (b, 0, 0)),
            pl.BlockSpec((D, 3 * D), lambda b: (0, 0)),
            pl.BlockSpec((1, 3 * D), lambda b: (0, 0)),
            pl.BlockSpec((H, dh, D), lambda b: (0, 0, 0)),
            pl.BlockSpec((1, D), lambda b: (0, 0)),
        ],
        out_specs=(
            pl.BlockSpec((1, L, D), lambda b: (b, 0, 0)),
            pl.BlockSpec((1, 2, D), lambda b: (b, 0, 0)),
        ),
        out_shape=(
            jax.ShapeDtypeStruct((B, L, D), jnp.float32),
            jax.ShapeDtypeStruct((B, 2, D), jnp.float32),
        ),
        compiler_params=cparams,
        cost_estimate=pl.CostEstimate(flops=int(k1_flops),
                                      transcendentals=int(B * H * L * L),
                                      bytes_accessed=int(k1_bytes)),
    )(x, wqkv, bqkv, wo_h, bo)

    x1_2d = x1.reshape(N, D)   # lane-dense (last dim D) 2-D layout for row tiling

    # ---------------- Kernel 2: BN1 + FFN + residual + partial BN2 stats ----------------
    k2_flops = 4 * N * D * F + 12 * N * D + 10 * N * F
    k2_bytes = 4 * (2 * N * D + 2 * B * D + 4 * D + 2 * D * F + F + 2 * nt * D)
    x2_2d, stat2 = pl.pallas_call(
        functools.partial(_bn_ffn_kernel, float(N), eps, compute_dtype),
        grid=(nt,),
        in_specs=[
            pl.BlockSpec((tm, D), lambda i: (i, 0)),
            pl.BlockSpec((B, 2, D), lambda i: (0, 0, 0)),
            pl.BlockSpec((1, D), lambda i: (0, 0)),
            pl.BlockSpec((1, D), lambda i: (0, 0)),
            pl.BlockSpec((D, F), lambda i: (0, 0)),
            pl.BlockSpec((1, F), lambda i: (0, 0)),
            pl.BlockSpec((F, D), lambda i: (0, 0)),
            pl.BlockSpec((1, D), lambda i: (0, 0)),
        ],
        out_specs=(
            pl.BlockSpec((tm, D), lambda i: (i, 0)),
            pl.BlockSpec((1, 2, D), lambda i: (i, 0, 0)),
        ),
        out_shape=(
            jax.ShapeDtypeStruct((N, D), jnp.float32),
            jax.ShapeDtypeStruct((nt, 2, D), jnp.float32),
        ),
        compiler_params=cparams,
        cost_estimate=pl.CostEstimate(flops=int(k2_flops),
                                      transcendentals=int(N * F),
                                      bytes_accessed=int(k2_bytes)),
    )(x1_2d, stat1, g1, be1, w1, b1, w2, b2)

    # ---------------- Kernel 3: BN2 apply ----------------
    out_2d = pl.pallas_call(
        functools.partial(_bn_apply_kernel, float(N), eps),
        grid=(nt,),
        in_specs=[
            pl.BlockSpec((tm, D), lambda i: (i, 0)),
            pl.BlockSpec((nt, 2, D), lambda i: (0, 0, 0)),
            pl.BlockSpec((1, D), lambda i: (0, 0)),
            pl.BlockSpec((1, D), lambda i: (0, 0)),
        ],
        out_specs=pl.BlockSpec((tm, D), lambda i: (i, 0)),
        out_shape=jax.ShapeDtypeStruct((N, D), x.dtype),
        compiler_params=cparams,
        cost_estimate=pl.CostEstimate(flops=int(8 * N * D),
                                      transcendentals=int(D),
                                      bytes_accessed=int(4 * (2 * N * D + 2 * nt * D + 2 * D))),
    )(x2_2d, stat2, g2, be2)

    return out_2d.reshape(B, L, D)


# --------------------------------------------------------------------------------------
# Params init (PyTorch-style Linear init; weights already transposed to (in, out))
# --------------------------------------------------------------------------------------
def init_params(key, d_model, d_ff, n_heads):
    d_head = d_model // n_heads
    ks = jax.random.split(key, 6)

    def lin(k, fan_in, fan_out):
        bound = 1.0 / math.sqrt(fan_in)
        w = jax.random.uniform(k, (fan_in, fan_out), jnp.float32, -bound, bound)   # = W.T
        b = jax.random.uniform(jax.random.fold_in(k, 1), (1, fan_out), jnp.float32,
                               -bound, bound)
        return w, b

    wq, bq = lin(ks[0], d_model, n_heads * d_head)
    wk, bk = lin(ks[1], d_model, n_heads * d_head)
    wv, bv = lin(ks[2], d_model, n_heads * d_head)
    wo, bo = lin(ks[3], n_heads * d_head, d_model)
    w1, b1 = lin(ks[4], d_model, d_ff)
    w2, b2 = lin(ks[5], d_ff, d_model)
    g1 = jnp.ones((1, d_model), jnp.float32)
    be1 = jnp.zeros((1, d_model), jnp.float32)
    g2 = jnp.ones((1, d_model), jnp.float32)
    be2 = jnp.zeros((1, d_model), jnp.float32)
    return (wq, bq, wk, bk, wv, bv, wo, bo, g1, be1, w1, b1, w2, b2, g2, be2)


# --------------------------------------------------------------------------------------
# Pure-JAX reference (mirrors the PyTorch forward; dropout = identity)
# --------------------------------------------------------------------------------------
def encoder_layer_ref(x, params, n_heads, eps=1e-5):
    (wq, bq, wk, bk, wv, bv, wo, bo, g1, be1, w1, b1, w2, b2, g2, be2) = params
    B, L, D = x.shape
    H = n_heads
    dh = D // H
    xf = x.reshape(B * L, D)
    q = (xf @ wq + bq).reshape(B, L, H, dh)
    k = (xf @ wk + bk).reshape(B, L, H, dh)
    v = (xf @ wv + bv).reshape(B, L, H, dh)
    scores = jnp.einsum('blhe,bshe->bhls', q, k)
    A = jax.nn.softmax(scores * (1.0 / math.sqrt(dh)), axis=-1)
    attn = jnp.einsum('bhls,bshd->blhd', A, v).reshape(B * L, H * dh)
    x1 = xf + (attn @ wo + bo)
    mu = x1.mean(0, keepdims=True)
    var = ((x1 - mu) ** 2).mean(0, keepdims=True)
    x1n = (x1 - mu) / jnp.sqrt(var + eps) * g1 + be1
    h = x1n @ w1 + b1
    h = 0.5 * h * (1.0 + jax.scipy.special.erf(h / math.sqrt(2.0)))
    x2 = x1n + (h @ w2 + b2)
    mu = x2.mean(0, keepdims=True)
    var = ((x2 - mu) ** 2).mean(0, keepdims=True)
    x2n = (x2 - mu) / jnp.sqrt(var + eps) * g2 + be2
    return x2n.reshape(B, L, D)


if __name__ == "__main__":
    # Small but lane-dense shapes (d_model multiple of 128 per the perf review).
    B, L, d_model, n_heads, d_ff = 2, 16, 128, 4, 256
    key = jax.random.PRNGKey(0)
    kx, kp = jax.random.split(key)
    x = jax.random.normal(kx, (B, L, d_model), jnp.float32)
    params = init_params(kp, d_model, d_ff, n_heads)

    ref = encoder_layer_ref(x, params, n_heads)

    # f32 MXU inputs: tight-ish check.
    out_f32 = encoder_layer_pallas(x, params, n_heads=n_heads, tile_rows=16,
                                   compute_dtype=jnp.float32)
    out_f32 = jax.block_until_ready(out_f32)
    assert out_f32.shape == (B, L, d_model)
    if not bool(jnp.allclose(out_f32, ref, atol=1e-2, rtol=1e-2)):
        raise AssertionError("f32 Pallas output does not match JAX reference")

    # bf16-in / f32-accumulate MXU path (v6e/v7x fast path): looser tolerance.
    out_bf16 = encoder_layer_pallas(x, params, n_heads=n_heads, tile_rows=16,
                                    compute_dtype=jnp.bfloat16)
    out_bf16 = jax.block_until_ready(out_bf16)
    if not bool(jnp.allclose(out_bf16, ref, atol=3e-2, rtol=3e-2)):
        raise AssertionError("bf16 Pallas output does not match JAX reference")

    print("KERNEL_OK")
</pallas_src>

<mosaic_0001>
module attributes {stable_mosaic.version = 11 : i64} {
  func.func @_attn_kernel(%arg0: i32, %arg1: memref<1x16x128xf32, #tpu.memory_space<vmem>>, %arg2: memref<128x384xf32, #tpu.memory_space<vmem>>, %arg3: memref<1x384xf32, #tpu.memory_space<vmem>>, %arg4: memref<4x32x128xf32, #tpu.memory_space<vmem>>, %arg5: memref<1x128xf32, #tpu.memory_space<vmem>>, %arg6: memref<1x16x128xf32, #tpu.memory_space<vmem>>, %arg7: memref<1x2x128xf32, #tpu.memory_space<vmem>>) attributes {dimension_semantics = [#tpu.dimension_semantics<parallel>], iteration_bounds = array<i64: 2>, scalar_prefetch = 0 : i64, scratch_operands = 0 : i64, tpu.core_type = #tpu.core_type<tc>, window_params = [{transform_indices = @transform_0, window_bounds = array<i64: 1, 16, 128>}, {pipeline_mode = #tpu.pipeline_mode<synchronous>, transform_indices = @transform_1, window_bounds = array<i64: 128, 384>}, {pipeline_mode = #tpu.pipeline_mode<synchronous>, transform_indices = @transform_2, window_bounds = array<i64: 1, 384>}, {pipeline_mode = #tpu.pipeline_mode<synchronous>, transform_indices = @transform_3, window_bounds = array<i64: 4, 32, 128>}, {pipeline_mode = #tpu.pipeline_mode<synchronous>, transform_indices = @transform_4, window_bounds = array<i64: 1, 128>}, {transform_indices = @transform_5, window_bounds = array<i64: 1, 16, 128>}, {transform_indices = @transform_6, window_bounds = array<i64: 1, 2, 128>}]} {
    %c0 = arith.constant 0 : index
    %c0_0 = arith.constant 0 : index
    %c0_1 = arith.constant 0 : index
    %0 = vector.load %arg1[%c0, %c0_0, %c0_1] : memref<1x16x128xf32, #tpu.memory_space<vmem>>, vector<1x16x128xf32>
    %1 = vector.shape_cast %0 : vector<1x16x128xf32> to vector<16x128xf32>
    %c0_2 = arith.constant 0 : index
    %c0_3 = arith.constant 0 : index
    %2 = vector.load %arg2[%c0_2, %c0_3] : memref<128x384xf32, #tpu.memory_space<vmem>>, vector<128x384xf32>
    %cst = arith.constant dense<0.000000e+00> : vector<16x384xf32>
    %3 = tpu.matmul %1, %2, %cst {dimension_numbers = #tpu.dot_dimension_numbers<[1], [0], [0], [1], [0, 0, 1, 1], [], []>} : vector<16x128xf32>, vector<128x384xf32>, vector<16x384xf32> -> vector<16x384xf32>
    %c0_4 = arith.constant 0 : index
    %c0_5 = arith.constant 0 : index
    %4 = vector.load %arg3[%c0_4, %c0_5] : memref<1x384xf32, #tpu.memory_space<vmem>>, vector<1x384xf32>
    %5 = vector.broadcast %4 : vector<1x384xf32> to vector<16x384xf32>
    %6 = arith.addf %3, %5 : vector<16x384xf32>
    %cst_6 = arith.constant 0.000000e+00 : f32
    %7 = vector.broadcast %cst_6 : f32 to vector<16x128xf32>
    %8 = vector.extract_strided_slice %6 {offsets = [0, 0], sizes = [16, 32], strides = [1, 1]} : vector<16x384xf32> to vector<16x32xf32>
    %9 = vector.extract_strided_slice %6 {offsets = [0, 128], sizes = [16, 32], strides = [1, 1]} : vector<16x384xf32> to vector<16x32xf32>
    %10 = vector.extract_strided_slice %6 {offsets = [0, 256], sizes = [16, 32], strides = [1, 1]} : vector<16x384xf32> to vector<16x32xf32>
    %cst_7 = arith.constant dense<0.000000e+00> : vector<16x16xf32>
    %11 = tpu.matmul %8, %9, %cst_7 {dimension_numbers = #tpu.dot_dimension_numbers<[1], [1], [0], [0], [0, 0, 1, 0], [], []>} : vector<16x32xf32>, vector<16x32xf32>, vector<16x16xf32> -> vector<16x16xf32>
    %cst_8 = arith.constant 0.176776692 : f32
    %12 = vector.broadcast %cst_8 : f32 to vector<16x16xf32>
    %13 = arith.mulf %11, %12 : vector<16x16xf32>
    %cst_9 = arith.constant dense<0xFF800000> : vector<16xf32>
    %14 = vector.multi_reduction <maximumf>, %13, %cst_9 [1] : vector<16x16xf32> to vector<16xf32>
    %15 = vector.shape_cast %14 : vector<16xf32> to vector<16x1xf32>
    %16 = vector.broadcast %15 : vector<16x1xf32> to vector<16x16xf32>
    %17 = arith.subf %13, %16 : vector<16x16xf32>
    %18 = math.exp %17 : vector<16x16xf32>
    %cst_10 = arith.constant dense<0.000000e+00> : vector<16xf32>
    %19 = vector.multi_reduction <add>, %18, %cst_10 [1] : vector<16x16xf32> to vector<16xf32>
    %20 = vector.shape_cast %19 : vector<16xf32> to vector<16x1xf32>
    %21 = tpu.reciprocal %20 {approx = true} : vector<16x1xf32> -> vector<16x1xf32>
    %22 = vector.broadcast %21 : vector<16x1xf32> to vector<16x16xf32>
    %23 = arith.mulf %18, %22 : vector<16x16xf32>
    %cst_11 = arith.constant dense<0.000000e+00> : vector<16x32xf32>
    %24 = tpu.matmul %23, %10, %cst_11 {dimension_numbers = #tpu.dot_dimension_numbers<[1], [0], [0], [1], [0, 0, 1, 1], [], []>} : vector<16x16xf32>, vector<16x32xf32>, vector<16x32xf32> -> vector<16x32xf32>
    %c0_12 = arith.constant 0 : index
    %c0_13 = arith.constant 0 : index
    %c0_14 = arith.constant 0 : index
    %25 = vector.load %arg4[%c0_12, %c0_13, %c0_14] : memref<4x32x128xf32, #tpu.memory_space<vmem>>, vector<1x32x128xf32>
    %26 = vector.shape_cast %25 : vector<1x32x128xf32> to vector<32x128xf32>
    %cst_15 = arith.constant dense<0.000000e+00> : vector<16x128xf32>
    %27 = tpu.matmul %24, %26, %cst_15 {dimension_numbers = #tpu.dot_dimension_numbers<[1], [0], [0], [1], [0, 0, 1, 1], [], []>} : vector<16x32xf32>, vector<32x128xf32>, vector<16x128xf32> -> vector<16x128xf32>
    %28 = arith.addf %7, %27 : vector<16x128xf32>
    %29 = vector.extract_strided_slice %6 {offsets = [0, 32], sizes = [16, 32], strides = [1, 1]} : vector<16x384xf32> to vector<16x32xf32>
    %30 = vector.extract_strided_slice %6 {offsets = [0, 160], sizes = [16, 32], strides = [1, 1]} : vector<16x384xf32> to vector<16x32xf32>
    %31 = vector.extract_strided_slice %6 {offsets = [0, 288], sizes = [16, 32], strides = [1, 1]} : vector<16x384xf32> to vector<16x32xf32>
    %cst_16 = arith.constant dense<0.000000e+00> : vector<16x16xf32>
    %32 = tpu.matmul %29, %30, %cst_16 {dimension_numbers = #tpu.dot_dimension_numbers<[1], [1], [0], [0], [0, 0, 1, 0], [], []>} : vector<16x32xf32>, vector<16x32xf32>, vector<16x16xf32> -> vector<16x16xf32>
    %cst_17 = arith.constant 0.176776692 : f32
    %33 = vector.broadcast %cst_17 : f32 to vector<16x16xf32>
    %34 = arith.mulf %32, %33 : vector<16x16xf32>
    %cst_18 = arith.constant dense<0xFF800000> : vector<16xf32>
    %35 = vector.multi_reduction <maximumf>, %34, %cst_18 [1] : vector<16x16xf32> to vector<16xf32>
    %36 = vector.shape_cast %35 : vector<16xf32> to vector<16x1xf32>
    %37 = vector.broadcast %36 : vector<16x1xf32> to vector<16x16xf32>
    %38 = arith.subf %34, %37 : vector<16x16xf32>
    %39 = math.exp %38 : vector<16x16xf32>
    %cst_19 = arith.constant dense<0.000000e+00> : vector<16xf32>
    %40 = vector.multi_reduction <add>, %39, %cst_19 [1] : vector<16x16xf32> to vector<16xf32>
    %41 = vector.shape_cast %40 : vector<16xf32> to vector<16x1xf32>
    %42 = tpu.reciprocal %41 {approx = true} : vector<16x1xf32> -> vector<16x1xf32>
    %43 = vector.broadcast %42 : vector<16x1xf32> to vector<16x16xf32>
    %44 = arith.mulf %39, %43 : vector<16x16xf32>
    %cst_20 = arith.constant dense<0.000000e+00> : vector<16x32xf32>
    %45 = tpu.matmul %44, %31, %cst_20 {dimension_numbers = #tpu.dot_dimension_numbers<[1], [0], [0], [1], [0, 0, 1, 1], [], []>} : vector<16x16xf32>, vector<16x32xf32>, vector<16x32xf32> -> vector<16x32xf32>
    %c1 = arith.constant 1 : index
    %c0_21 = arith.constant 0 : index
    %c0_22 = arith.constant 0 : index
    %46 = vector.load %arg4[%c1, %c0_21, %c0_22] : memref<4x32x128xf32, #tpu.memory_space<vmem>>, vector<1x32x128xf32>
    %47 = vector.shape_cast %46 : vector<1x32x128xf32> to vector<32x128xf32>
    %cst_23 = arith.constant dense<0.000000e+00> : vector<16x128xf32>
    %48 = tpu.matmul %45, %47, %cst_23 {dimension_numbers = #tpu.dot_dimension_numbers<[1], [0], [0], [1], [0, 0, 1, 1], [], []>} : vector<16x32xf32>, vector<32x128xf32>, vector<16x128xf32> -> vector<16x128xf32>
    %49 = arith.addf %28, %48 : vector<16x128xf32>
    %50 = vector.extract_strided_slice %6 {offsets = [0, 64], sizes = [16, 32], strides = [1, 1]} : vector<16x384xf32> to vector<16x32xf32>
    %51 = vector.extract_strided_slice %6 {offsets = [0, 192], sizes = [16, 32], strides = [1, 1]} : vector<16x384xf32> to vector<16x32xf32>
    %52 = vector.extract_strided_slice %6 {offsets = [0, 320], sizes = [16, 32], strides = [1, 1]} : vector<16x384xf32> to vector<16x32xf32>
    %cst_24 = arith.constant dense<0.000000e+00> : vector<16x16xf32>
    %53 = tpu.matmul %50, %51, %cst_24 {dimension_numbers = #tpu.dot_dimension_numbers<[1], [1], [0], [0], [0, 0, 1, 0], [], []>} : vector<16x32xf32>, vector<16x32xf32>, vector<16x16xf32> -> vector<16x16xf32>
    %cst_25 = arith.constant 0.176776692 : f32
    %54 = vector.broadcast %cst_25 : f32 to vector<16x16xf32>
    %55 = arith.mulf %53, %54 : vector<16x16xf32>
    %cst_26 = arith.constant dense<0xFF800000> : vector<16xf32>
    %56 = vector.multi_reduction <maximumf>, %55, %cst_26 [1] : vector<16x16xf32> to vector<16xf32>
    %57 = vector.shape_cast %56 : vector<16xf32> to vector<16x1xf32>
    %58 = vector.broadcast %57 : vector<16x1xf32> to vector<16x16xf32>
    %59 = arith.subf %55, %58 : vector<16x16xf32>
    %60 = math.exp %59 : vector<16x16xf32>
    %cst_27 = arith.constant dense<0.000000e+00> : vector<16xf32>
    %61 = vector.multi_reduction <add>, %60, %cst_27 [1] : vector<16x16xf32> to vector<16xf32>
    %62 = vector.shape_cast %61 : vector<16xf32> to vector<16x1xf32>
    %63 = tpu.reciprocal %62 {approx = true} : vector<16x1xf32> -> vector<16x1xf32>
    %64 = vector.broadcast %63 : vector<16x1xf32> to vector<16x16xf32>
    %65 = arith.mulf %60, %64 : vector<16x16xf32>
    %cst_28 = arith.constant dense<0.000000e+00> : vector<16x32xf32>
    %66 = tpu.matmul %65, %52, %cst_28 {dimension_numbers = #tpu.dot_dimension_numbers<[1], [0], [0], [1], [0, 0, 1, 1], [], []>} : vector<16x16xf32>, vector<16x32xf32>, vector<16x32xf32> -> vector<16x32xf32>
    %c2 = arith.constant 2 : index
    %c0_29 = arith.constant 0 : index
    %c0_30 = arith.constant 0 : index
    %67 = vector.load %arg4[%c2, %c0_29, %c0_30] : memref<4x32x128xf32, #tpu.memory_space<vmem>>, vector<1x32x128xf32>
    %68 = vector.shape_cast %67 : vector<1x32x128xf32> to vector<32x128xf32>
    %cst_31 = arith.constant dense<0.000000e+00> : vector<16x128xf32>
    %69 = tpu.matmul %66, %68, %cst_31 {dimension_numbers = #tpu.dot_dimension_numbers<[1], [0], [0], [1], [0, 0, 1, 1], [], []>} : vector<16x32xf32>, vector<32x128xf32>, vector<16x128xf32> -> vector<16x128xf32>
    %70 = arith.addf %49, %69 : vector<16x128xf32>
    %71 = vector.extract_strided_slice %6 {offsets = [0, 96], sizes = [16, 32], strides = [1, 1]} : vector<16x384xf32> to vector<16x32xf32>
    %72 = vector.extract_strided_slice %6 {offsets = [0, 224], sizes = [16, 32], strides = [1, 1]} : vector<16x384xf32> to vector<16x32xf32>
    %73 = vector.extract_strided_slice %6 {offsets = [0, 352], sizes = [16, 32], strides = [1, 1]} : vector<16x384xf32> to vector<16x32xf32>
    %cst_32 = arith.constant dense<0.000000e+00> : vector<16x16xf32>
    %74 = tpu.matmul %71, %72, %cst_32 {dimension_numbers = #tpu.dot_dimension_numbers<[1], [1], [0], [0], [0, 0, 1, 0], [], []>} : vector<16x32xf32>, vector<16x32xf32>, vector<16x16xf32> -> vector<16x16xf32>
    %cst_33 = arith.constant 0.176776692 : f32
    %75 = vector.broadcast %cst_33 : f32 to vector<16x16xf32>
    %76 = arith.mulf %74, %75 : vector<16x16xf32>
    %cst_34 = arith.constant dense<0xFF800000> : vector<16xf32>
    %77 = vector.multi_reduction <maximumf>, %76, %cst_34 [1] : vector<16x16xf32> to vector<16xf32>
    %78 = vector.shape_cast %77 : vector<16xf32> to vector<16x1xf32>
    %79 = vector.broadcast %78 : vector<16x1xf32> to vector<16x16xf32>
    %80 = arith.subf %76, %79 : vector<16x16xf32>
    %81 = math.exp %80 : vector<16x16xf32>
    %cst_35 = arith.constant dense<0.000000e+00> : vector<16xf32>
    %82 = vector.multi_reduction <add>, %81, %cst_35 [1] : vector<16x16xf32> to vector<16xf32>
    %83 = vector.shape_cast %82 : vector<16xf32> to vector<16x1xf32>
    %84 = tpu.reciprocal %83 {approx = true} : vector<16x1xf32> -> vector<16x1xf32>
    %85 = vector.broadcast %84 : vector<16x1xf32> to vector<16x16xf32>
    %86 = arith.mulf %81, %85 : vector<16x16xf32>
    %cst_36 = arith.constant dense<0.000000e+00> : vector<16x32xf32>
    %87 = tpu.matmul %86, %73, %cst_36 {dimension_numbers = #tpu.dot_dimension_numbers<[1], [0], [0], [1], [0, 0, 1, 1], [], []>} : vector<16x16xf32>, vector<16x32xf32>, vector<16x32xf32> -> vector<16x32xf32>
    %c3 = arith.constant 3 : index
    %c0_37 = arith.constant 0 : index
    %c0_38 = arith.constant 0 : index
    %88 = vector.load %arg4[%c3, %c0_37, %c0_38] : memref<4x32x128xf32, #tpu.memory_space<vmem>>, vector<1x32x128xf32>
    %89 = vector.shape_cast %88 : vector<1x32x128xf32> to vector<32x128xf32>
    %cst_39 = arith.constant dense<0.000000e+00> : vector<16x128xf32>
    %90 = tpu.matmul %87, %89, %cst_39 {dimension_numbers = #tpu.dot_dimension_numbers<[1], [0], [0], [1], [0, 0, 1, 1], [], []>} : vector<16x32xf32>, vector<32x128xf32>, vector<16x128xf32> -> vector<16x128xf32>
    %91 = arith.addf %70, %90 : vector<16x128xf32>
    %92 = arith.addf %1, %91 : vector<16x128xf32>
    %c0_40 = arith.constant 0 : index
    %c0_41 = arith.constant 0 : index
    %93 = vector.load %arg5[%c0_40, %c0_41] : memref<1x128xf32, #tpu.memory_space<vmem>>, vector<1x128xf32>
    %94 = vector.broadcast %93 : vector<1x128xf32> to vector<16x128xf32>
    %95 = arith.addf %92, %94 : vector<16x128xf32>
    %c0_42 = arith.constant 0 : index
    %c0_43 = arith.constant 0 : index
    %c0_44 = arith.constant 0 : index
    %96 = vector.load %arg6[%c0_42, %c0_43, %c0_44] : memref<1x16x128xf32, #tpu.memory_space<vmem>>, vector<1x16x128xf32>
    %97 = vector.shape_cast %96 : vector<1x16x128xf32> to vector<16x128xf32>
    %98 = vector.shape_cast %95 : vector<16x128xf32> to vector<1x16x128xf32>
    tpu.vector_store %arg6[%c0_42, %c0_43, %c0_44], %98 {strides = array<i32>} : memref<1x16x128xf32, #tpu.memory_space<vmem>>, vector<1x16x128xf32>,
    %cst_45 = arith.constant dense<0.000000e+00> : vector<128xf32>
    %99 = vector.multi_reduction <add>, %95, %cst_45 [0] : vector<16x128xf32> to vector<128xf32>
    %100 = vector.shape_cast %99 : vector<128xf32> to vector<1x128xf32>
    %101 = arith.mulf %95, %95 : vector<16x128xf32>
    %cst_46 = arith.constant dense<0.000000e+00> : vector<128xf32>
    %102 = vector.multi_reduction <add>, %101, %cst_46 [0] : vector<16x128xf32> to vector<128xf32>
    %103 = vector.shape_cast %102 : vector<128xf32> to vector<1x128xf32>
    %104 = tpu.concatenate %100, %103 in 0 : vector<1x128xf32>, vector<1x128xf32> -> vector<2x128xf32>
    %c0_47 = arith.constant 0 : index
    %c0_48 = arith.constant 0 : index
    %c0_49 = arith.constant 0 : index
    %105 = vector.load %arg7[%c0_47, %c0_48, %c0_49] : memref<1x2x128xf32, #tpu.memory_space<vmem>>, vector<1x2x128xf32>
    %106 = vector.shape_cast %105 : vector<1x2x128xf32> to vector<2x128xf32>
    %107 = vector.shape_cast %104 : vector<2x128xf32> to vector<1x2x128xf32>
    tpu.vector_store %arg7[%c0_47, %c0_48, %c0_49], %107 {strides = array<i32>} : memref<1x2x128xf32, #tpu.memory_space<vmem>>, vector<1x2x128xf32>,
    return
  }
  func.func @transform_0(%arg0: i32) -> (i32, i32, i32) {
    %c0_i32 = arith.constant 0 : i32
    %c0_i32_0 = arith.constant 0 : i32
    %c0_i32_1 = arith.constant 0 : i32
    return %arg0, %c0_i32, %c0_i32_0 : i32, i32, i32
  }
  func.func @transform_1(%arg0: i32) -> (i32, i32) {
    %c0_i32 = arith.constant 0 : i32
    %c0_i32_0 = arith.constant 0 : i32
    %c0_i32_1 = arith.constant 0 : i32
    return %c0_i32, %c0_i32_0 : i32, i32
  }
  func.func @transform_2(%arg0: i32) -> (i32, i32) {
    %c0_i32 = arith.constant 0 : i32
    %c0_i32_0 = arith.constant 0 : i32
    %c0_i32_1 = arith.constant 0 : i32
    return %c0_i32, %c0_i32_0 : i32, i32
  }
  func.func @transform_3(%arg0: i32) -> (i32, i32, i32) {
    %c0_i32 = arith.constant 0 : i32
    %c0_i32_0 = arith.constant 0 : i32
    %c0_i32_1 = arith.constant 0 : i32
    %c0_i32_2 = arith.constant 0 : i32
    return %c0_i32, %c0_i32_0, %c0_i32_1 : i32, i32, i32
  }
  func.func @transform_4(%arg0: i32) -> (i32, i32) {
    %c0_i32 = arith.constant 0 : i32
    %c0_i32_0 = arith.constant 0 : i32
    %c0_i32_1 = arith.constant 0 : i32
    return %c0_i32, %c0_i32_0 : i32, i32
  }
  func.func @transform_5(%arg0: i32) -> (i32, i32, i32) {
    %c0_i32 = arith.constant 0 : i32
    %c0_i32_0 = arith.constant 0 : i32
    %c0_i32_1 = arith.constant 0 : i32
    return %arg0, %c0_i32, %c0_i32_0 : i32, i32, i32
  }
  func.func @transform_6(%arg0: i32) -> (i32, i32, i32) {
    %c0_i32 = arith.constant 0 : i32
    %c0_i32_0 = arith.constant 0 : i32
    %c0_i32_1 = arith.constant 0 : i32
    return %arg0, %c0_i32, %c0_i32_0 : i32, i32, i32
  }
}

</mosaic_0001>

<bundles_post_ra>
// kernel: tpu_custom_call.1
= control target key start
LH: loop header
LB: loop body
LE: loop exit
PB: predicated region body
PF: predicated region fallthrough
CT: control target
= control target key end

     0   :  { %12 = vsyncpa [#allocation3], 0  ;;  %s3066_s0 = inlined_call_operand.hbm [shape: f32[2,16,128], index: 0, kind: input, shape index: {}]   ;;  %s3067_s1 = inlined_call_operand.hbm [shape: f32[128,384], index: 1, kind: input, shape index: {}]   ;;  %s3068_s2 = inlined_call_operand.vmem [shape: f32[1,384], index: 2, kind: input, shape index: {}]   ;;  %s3069_s3 = inlined_call_operand.hbm [shape: f32[4,32,128], index: 3, kind: input, shape index: {}]   ;;  %s3070_s4 = inlined_call_operand.vmem [shape: f32[1,128], index: 4, kind: input, shape index: {}]   ;;  %s3071_s5 = inlined_call_operand.hbm [shape: f32[2,16,128], index: 5, kind: output, shape index: {0}]   ;;  %s3072_s6 = inlined_call_operand.hbm [shape: f32[2,2,128], index: 6, kind: output, shape index: {1}]  }
   0x1   :  { %14 = vsyncpa [#allocation3 + $0x1], 0 }
   0x2   :  { %15 = vsyncpa [#allocation6], 0 }
   0x3   :  { %16 = vsyncpa [#allocation4], 0 }
   0x4   :  { %18 = vsyncpa [#allocation4 + $0x1], 0 }
   0x5   :  { %19 = vsyncpa [#allocation10], 0 }
   0x6   :  { %21 = vsyncpa [#allocation10 + $0x1], 0  ;;  %s2657_s21 = smov 0   ;;  %s2659_s22 = smov 0  }
   0x7   :  { %s2661_s23 = smov 0   ;;  %s2663_s24 = smov 0  }
   0x8 LB: > { %s2678_s25 = sadd.s32 4294967295, %s2605_s24   ;;  %s1866_s26 = sadd.s32 4294967294, %s2605_s24   ;;  %s2605_s24 = sphi %s2663_s24, %s3094_s24   ;;  %s2601_s23 = sphi %s2661_s23, %s3093_s23   ;;  %s2597_s22 = sphi %s2659_s22, %s3092_s22   ;;  %s2593_s21 = sphi %s2657_s21, %s3091_s21  }
   0x9   : > { %p47_p0 = scmp.ne.s32.totalorder %s2597_s22, %s2593_s21  ;;  %p3073_p1 = scmp.eq.s32.totalorder %s2678_s25, 0 }
   0xa   : > { %p161_p3 = scmp.eq.s32.totalorder %s1866_s26, 1  ;;  %p1867_p5 = scmp.ge.s32.totalorder %s2605_s24, 1 }
   0xb   : > { %p2687_p4 = por %p3073_p1, %p47_p0  ;;  %p194_p7 = scmp.lt.s32.totalorder %s2605_s24, 3 }
   0xc   : > { %p2692_p6 = por %p161_p3, %p47_p0  ;;  %s2607_s30 = smov [#allocation5]  }
   0xd   : > { %s3076_s27 = scalar_select %p2687_p4, 1, 0 }
   0xe   : > { %s3077_s28 = scalar_select %p2692_p6, 1, 0 }
   0xf   : > { %p2697_p8 = pnand %p1867_p5, %p194_p7  ;;  %s206_s7 = sshll.u32 %s2607_s30, 4  ;;  %s2701_s7 = int_to_ptr.vmem [resolvable:$true] %s206_s7 }
  0x10   : > { %s2608_s9 = smov [#allocation7]   ;;  %s2417_s13 = scalar_lea.hbm %s3067_s1, 6144 }
  0x11   : > { %p2287_p9 = pneg %p2697_p8  ;;  %s222_s10 = sshll.u32 %s2608_s9, 4  ;;  %s2712_s10 = int_to_ptr.vmem [resolvable:$true] %s222_s10 }
  0x12   : > { %p2418_p12 = scmp.ne.s32.totalorder %s3067_s1, %s2417_s13  ;;  %p2424_p5 = scmp.lt.u32.totalorder %s2417_s13, %s3067_s1 }
  0x13   : > { %p2708_p11 = pnand %p2287_p9, %p3073_p1 }
  0x15   : > { %p2419_p13 = pneg %p2708_p11 }
  0x17   : > { %p2420_p0 = pnand %p2419_p13, %p2418_p12 }
  0x19   : > { %p2421_p3 = pneg %p2420_p0 }
  0x1b   : > { %p2426_p7 = pnand %p2424_p5, %p2421_p3 }
  0x1d   : > { %2429 = shalt.err (!%p2426_p7)
}
  0x1e   : > { %s2430_s18 = scalar_lea.vmem %s2701_s7, 6144  ;;  %p2438_p2 = scmp.lt.s32.totalorder %s2701_s7, %s2701_s7 }
  0x1f   : > { %p2431_p9 = scmp.ne.s32.totalorder %s2701_s7, %s2430_s18  ;;  %p2439_p12 = scmp.lt.s32.totalorder %s2430_s18, %s2430_s18 }
  0x21   : > { %p2433_p10 = pnand %p2431_p9, %p2419_p13  ;;  %p2440_p0 = por %p2439_p12, %p2438_p2 }
  0x23   : > { %p2434_p1 = pneg %p2433_p10 }
  0x25   : > { %p2441_p6 = pnand %p2440_p0, %p2434_p1 }
  0x27   : > { %2444 = shalt.err (!%p2441_p6)
}
  0x28   : > { %s2609_s19 = smov 384   ;;  %s2610_s20 = smov 24  }
  0x29   : > { %2290 = dma.hbm_to_vmem [thread:$0]  (!%p2708_p11), %s3067_s1, 6144, %s2701_s7, [#allocation6], %s2609_s19, %s2609_s19, %s2610_s20  }
  0x2a   : > { %s2445_s12 = scalar_lea.hbm %s3069_s3, 2048 }
  0x2b   : > { %p2446_p2 = scmp.ne.s32.totalorder %s3069_s3, %s2445_s12  ;;  %p2452_p10 = scmp.lt.u32.totalorder %s2445_s12, %s3069_s3 }
  0x2d   : > { %p2448_p1 = pnand %p2446_p2, %p2419_p13 }
  0x2f   : > { %p2449_p6 = pneg %p2448_p1 }
  0x31   : > { %p2454_p3 = pnand %p2452_p10, %p2449_p6 }
  0x33   : > { %2457 = shalt.err (!%p2454_p3)
}
  0x34   : > { %s2458_s7 = scalar_lea.vmem %s2712_s10, 2048  ;;  %p2466_p12 = scmp.lt.s32.totalorder %s2712_s10, %s2712_s10 }
  0x35   : > { %p2459_p5 = scmp.ne.s32.totalorder %s2712_s10, %s2458_s7  ;;  %p2467_p0 = scmp.lt.s32.totalorder %s2458_s7, %s2458_s7 }
  0x37   : > { %p2461_p7 = pnand %p2459_p5, %p2419_p13  ;;  %p2468_p2 = por %p2467_p0, %p2466_p12 }
  0x39   : > { %p2462_p9 = pneg %p2461_p7 }
  0x3b   : > { %p2469_p1 = pnand %p2468_p2, %p2462_p9 }
  0x3d   : > { %2472 = shalt.err (!%p2469_p1)
}
  0x3e   : > { %s2611_s17 = smov 128   ;;  %s2612_s18 = smov 8  }
  0x3f   : > { %2293 = dma.hbm_to_vmem [thread:$0]  (!%p2708_p11), %s3069_s3, 2048, %s2712_s10, [#allocation6], %s2611_s17, %s2611_s17, %s2612_s18  }
  0x40   : > { %s2770_s26 = sadd.s32 1, %s2605_s24   ;;  %s34_s9 = sadd.s32 1, %s2601_s23 }
  0x41   : > { %s31_s30 = ssub.s32 %s2605_s24, %s2770_s26  ;;  %p41_p6 = scmp.ne.s32.totalorder %s2601_s23, %s2597_s22 }
  0x42   : > { %p32_p13 = scmp.eq.s32.totalorder %s31_s30, 0  ;;  %p42_p10 = scmp.eq.s32.totalorder %s2605_s24, 0 }
  0x43   : > { %p3080_p5 = scmp.eq.s32.totalorder %s2678_s25, 1  ;;  %p2307_p9 = scmp.lt.s32.totalorder %s2605_s24, 2 }
  0x44   : > { %s2779_s11 = scalar_select %p32_p13, %s2601_s23, %s34_s9  }
  0x45   : > { %p43_p3 = por %p42_p10, %p41_p6  ;;  %p2783_p7 = por %p3080_p5, %p41_p6 }
  0x46   : > { %s239_s12 = sand.u32 1, %s2601_s23   ;;  %s1920_s10 = sshll.u32 %s2605_s24, 8 }
  0x47   : > { %s3081_s8 = scalar_select %p2783_p7, 1, 0 }
  0x48   : > { %s1871_s13 = sshll.u32 %s239_s12, 4  ;;  %s2793_s16 = scalar_lea.hbm %s3066_s0, %s1920_s10 }
  0x49   : > { %s243_s7 = scalar_lea.vmem [#allocation2], %s1871_s13  ;;  %p2797_p11 = pnand %p2307_p9, %p43_p3 }
  0x4a   : > { %s250_s19 = sshll.u32 %s243_s7, 4  ;;  %s2801_s30 = scalar_lea.sflag [#allocation3], %s239_s12  ;;  %s2795_s19 = int_to_ptr.vmem [resolvable:$true] %s250_s19 }
  0x4b   : > { %s2473_s9 = scalar_lea.hbm %s2793_s16, 256  ;;  %p2475_p0 = pneg %p2797_p11 }
  0x4c   : > { %p2474_p12 = scmp.ne.s32.totalorder %s2793_s16, %s2473_s9  ;;  %s2478_s14 = scalar_lea.hbm %s3066_s0, 512 }
  0x4d   : > { %p2479_p13 = scmp.lt.u32.totalorder %s2793_s16, %s3066_s0  ;;  %p2480_p6 = scmp.lt.u32.totalorder %s2478_s14, %s2473_s9 }
  0x4e   : > { %p2476_p2 = pnand %p2475_p0, %p2474_p12  ;;  %p2482_p3 = scmp.lt.u32.totalorder %s2473_s9, %s2793_s16 }
  0x4f   : > { %p2481_p10 = por %p2480_p6, %p2479_p13 }
  0x50   : > { %p2477_p1 = pneg %p2476_p2 }
  0x51   : > { %p2483_p5 = por %p2482_p3, %p2481_p10 }
  0x53   : > { %p2484_p9 = pnand %p2483_p5, %p2477_p1 }
  0x55   : > { %2487 = shalt.err (!%p2484_p9)
}
  0x56   : > { %s2488_s12 = scalar_lea.vmem %s2795_s19, 256  ;;  %s2613_s13 = smov [#allocation2]  }
  0x57   : > { %p2489_p12 = scmp.ne.s32.totalorder %s2795_s19, %s2488_s12  ;;  %s2493_s10 = sshll.u32 %s2613_s13, 4  ;;  %s2494_s10 = int_to_ptr.vmem [resolvable:$false] %s2493_s10 }
  0x58   : > { %s2495_s15 = scalar_lea.vmem %s2494_s10, 512  ;;  %p2496_p4 = scmp.lt.s32.totalorder %s2795_s19, %s2494_s10 }
  0x59   : > { %p2491_p2 = pnand %p2489_p12, %p2475_p0  ;;  %p2497_p13 = scmp.lt.s32.totalorder %s2495_s15, %s2488_s12 }
  0x5b   : > { %p2492_p7 = pneg %p2491_p2  ;;  %p2498_p6 = por %p2497_p13, %p2496_p4 }
  0x5d   : > { %p2499_p10 = pnand %p2498_p6, %p2492_p7 }
  0x5f   : > { %2502 = shalt.err (!%p2499_p10)
}
  0x60   : > { %2297 = dma.hbm_to_vmem [thread:$0]  (!%p2797_p11), %s2793_s16, 256, %s2795_s19, %s2801_s30, %s2611_s17, %s2611_s17, %s2612_s18  }
  0x61   : > { %262 = sbr.rel (%p2697_p8) target bundleno = 3006 (0xbbe), region = 40  ;;  %s2835_s9 = sand.u32 (!%p2697_p8), 1, %s2597_s22  }
  0x62   : > { %s1875_s14 = sshll.u32 (!%p2697_p8), %s2835_s9, 4  ;;  %s265_s7 = scalar_lea.sflag (!%p2697_p8), [#allocation3], %s2835_s9 }
  0x63   : > { %s2841_s20 = scalar_lea.vmem (!%p2697_p8), [#allocation2], %s1875_s14  ;;  %p3083_p4 = scmp.ne.s32.totalorder (!%p2697_p8), %s3076_s27, 0 }
  0x68   : > { %2576 = dma.done.wait (%p3083_p4), %s265_s7, 256  }
  0x69   : > { %2578 = vsyncadd (%p3083_p4), %s265_s7, 4294967040  ;;  %p3084_p7 = scmp.eq.s32.totalorder %s2678_s25, 0 }
  0x6b   : > { %2580 = dma.done.wait (%p3084_p7), [#allocation6], 8192   ;;  %p3085_p8 = pmov %p3084_p7 }
  0x6c   : > { %v2614_v0 = vmov 0.0   ;;  %v313_v1 = vld [vmem:[#allocation5 + $0x8] sm:$0xff]  ;;  %v316_v2 = vld [vmem:[#allocation5 + $0x20] sm:$0xff]  ;;  %v315_v5 = vld [vmem:[#allocation5 + $0x18] sm:$0xff]  ;;  %v362_v51 = vlaneseq  ;;  %vm529_vm0 = vcmask 261120   ;;  %s2615_s17 = smov 96  }
  0x6d   : > { %2582 = vsyncadd (%p3085_p8), [#allocation6], 4294959104  ;;  %441 = vmatprep.mubr.f32.mxu0 %v2614_v0  ;;  %v312_v3 = vld [vmem:[#allocation5] sm:$0xff]  ;;  %v2131_v4 = vpack.c.bf16 %v316_v2, %v313_v1  ;;  %v319_v6 = vld [vmem:[#allocation5 + $0x38] sm:$0xff]  ;;  %vm619_vm2 = vcmask 130048   ;;  %s2616_s18 = smov 64  }
  0x6e   : > { %v322_v7 = vld [vmem:[#allocation5 + $0x50] sm:$0xff]  ;;  %v2133_v8 = vpack.c.bf16 %v315_v5, %v312_v3  ;;  %v321_v11 = vld [vmem:[#allocation5 + $0x48] sm:$0xff]  ;;  %v328_v13 = vld [vmem:[#allocation5 + $0x80] sm:$0xff]  ;;  %v2862_v52 = vshrl.u32 %v362_v51, 7  ;;  %s2617_s16 = smov 32   ;;  %s302_s19 = scalar_lea.vmem [#allocation8], %s1875_s14 }
  0x6f   : > { %v2135_v9 = vpack.c.bf16 %v322_v7, %v319_v6  ;;  %v318_v10 = vld [vmem:[#allocation5 + $0x30] sm:$0xff]  ;;  %v325_v12 = vld [vmem:[#allocation5 + $0x68] sm:$0xff]  ;;  %2132 = vmatprep.subr.bf16.mxu0 %v2131_v4  ;;  %v324_v16 = vld [vmem:[#allocation5 + $0x60] sm:$0xff]  ;;  %s1729_s30 = sshll.u32 %s302_s19, 4  ;;  %s1921_s10 = sshll.u32 %s2678_s25, 8  ;;  %s2985_s30 = int_to_ptr.vmem [resolvable:$true] %s1729_s30 }
  0x70   : > { %2134 = vmatpush1.bf16.msra.mxu0 %v2133_v8  ;;  %v2137_v14 = vpack.c.bf16 %v321_v11, %v318_v10  ;;  %v2139_v15 = vpack.c.bf16 %v328_v13, %v325_v12  ;;  %v327_v17 = vld [vmem:[#allocation5 + $0x78] sm:$0xff]  ;;  %v334_v19 = vld [vmem:[#allocation5 + $0xb0] sm:$0xff]  ;;  %v333_v23 = vld [vmem:[#allocation5 + $0xa8] sm:$0xff]  ;;  %v364_v61 = vsub.s32 0, %v2862_v52  ;;  %v368_v3 = vsub.s32 1, %v2862_v52  ;;  %s2991_s7 = scalar_lea.hbm %s3071_s5, %s1921_s10  ;;  %s2503_s27 = scalar_lea.vmem %s2985_s30, 256 }
  0x71   : > { %2136 = vmatprep.subr.bf16.mxu0 %v2135_v9  ;;  %v331_v18 = vld [vmem:[#allocation5 + $0x98] sm:$0xff]  ;;  %v2141_v20 = vpack.c.bf16 %v327_v17, %v324_v16  ;;  %v330_v22 = vld [vmem:[#allocation5 + $0x90] sm:$0xff]  ;;  %v337_v24 = vld [vmem:[#allocation5 + $0xc8] sm:$0xff]  ;;  %p2504_p11 = scmp.ne.s32.totalorder %s2985_s30, %s2503_s27  ;;  %p3088_p0 = scmp.ne.s32.totalorder %s3081_s8, 0 }
  0x72   : > { %v2143_v21 = vpack.c.bf16 %v334_v19, %v331_v18  ;;  %v340_v25 = vld [vmem:[#allocation5 + $0xe0] sm:$0xff]  ;;  %v2145_v27 = vpack.c.bf16 %v333_v23, %v330_v22  ;;  %v339_v30 = vld [vmem:[#allocation5 + $0xd8] sm:$0xff]  ;;  %v346_v32 = vld [vmem:[#allocation5 + $0x110] sm:$0xff]  ;;  %s2618_s29 = smov [#allocation8]  }
  0x73   : > { %v2853_v26 = vld [vmem:[%s2841_s20] sm:$0xff]  ;;  %v2147_v28 = vpack.c.bf16 %v340_v25, %v337_v24  ;;  %v343_v31 = vld [vmem:[#allocation5 + $0xf8] sm:$0xff]  ;;  %v345_v36 = vld [vmem:[#allocation5 + $0x108] sm:$0xff]  ;;  %p2505_p1 = pnand %p2504_p11, %p3088_p0 }
  0x74   : > { %2138 = vmatpush1.bf16.msra.mxu0 %v2137_v14  ;;  %2028 = vmatprep.mubr.f32.mxu1 %v2853_v26  ;;  %v336_v29 = vld [vmem:[#allocation5 + $0xc0] sm:$0xff]  ;;  %v2151_v34 = vpack.c.bf16 %v346_v32, %v343_v31  ;;  %v342_v35 = vld [vmem:[#allocation5 + $0xf0] sm:$0xff]  ;;  %v349_v37 = vld [vmem:[#allocation5 + $0x128] sm:$0xff] }
  0x75   : > { %2140 = vmatprep.subr.bf16.mxu0 %v2139_v15  ;;  %v2149_v33 = vpack.c.bf16 %v339_v30, %v336_v29  ;;  %v352_v38 = vld [vmem:[#allocation5 + $0x140] sm:$0xff]  ;;  %v2153_v39 = vpack.c.bf16 %v345_v36, %v342_v35  ;;  %v351_v42 = vld [vmem:[#allocation5 + $0x138] sm:$0xff]  ;;  %v358_v44 = vld [vmem:[#allocation5 + $0x170] sm:$0xff]  ;;  %v372_v36 = vsub.s32 2, %v2862_v52  ;;  %p2506_p3 = pneg %p2505_p1 }
  0x76   : > { %v2155_v40 = vpack.c.bf16 %v352_v38, %v349_v37  ;;  %v348_v41 = vld [vmem:[#allocation5 + $0x120] sm:$0xff]  ;;  %v355_v43 = vld [vmem:[#allocation5 + $0x158] sm:$0xff]  ;;  %v354_v47 = vld [vmem:[#allocation5 + $0x150] sm:$0xff] }
  0x77   : > { %v2157_v45 = vpack.c.bf16 %v351_v42, %v348_v41  ;;  %v2159_v46 = vpack.c.bf16 %v358_v44, %v355_v43  ;;  %v357_v48 = vld [vmem:[#allocation5 + $0x168] sm:$0xff]  ;;  %v314_v53 = vld [vmem:[#allocation5 + $0x10] sm:$0xff]  ;;  %v320_v55 = vld [vmem:[#allocation5 + $0x40] sm:$0xff] }
  0x78   : > { %2142 = vmatpush1.bf16.msra.mxu0 %v2141_v20  ;;  %v2161_v49 = vpack.c.bf16 %v357_v48, %v354_v47  ;;  %v2859_v50 = vld [vmem:[%s2841_s20 + $0x8] sm:$0xff]  ;;  %v326_v59 = vld [vmem:[#allocation5 + $0x70] sm:$0xff]  ;;  %v2868_v62 = vld [vmem:[%s3068_s2] sm:$0x7]  ;;  %s1711_s20 = scalar_lea.sflag [#allocation4], %s2835_s9 }
  0x79   : > { %2144 = vmatprep.subr.bf16.mxu0 %v2143_v21  ;;  %v317_v54 = vld [vmem:[#allocation5 + $0x28] sm:$0xff]  ;;  %v323_v57 = vld [vmem:[#allocation5 + $0x58] sm:$0xff]  ;;  %v365_v2 = vrot.slane %v2868_v62, %v364_v61  ;;  %v338_v5 = vld [vmem:[#allocation5 + $0xd0] sm:$0xff]  ;;  %v369_v10 = vrot.slane %v2868_v62, %v368_v3  ;;  %v373_v37 = vrot.slane %v2868_v62, %v372_v36 }
  0x7a   : > { %v2163_v56 = vpack.c.bf16 %v317_v54, %v314_v53  ;;  %v2167_v58 = vpack.c.bf16 %v323_v57, %v320_v55  ;;  %v329_v60 = vld [vmem:[#allocation5 + $0x88] sm:$0xff]  ;;  %v335_v1 = vld [vmem:[#allocation5 + $0xb8] sm:$0xff]  ;;  %v344_v12 = vld [vmem:[#allocation5 + $0x100] sm:$0xff] }
  0x7b   : > { %v2171_v63 = vpack.c.bf16 %v329_v60, %v326_v59  ;;  %v341_v6 = vld [vmem:[#allocation5 + $0xe8] sm:$0xff]  ;;  %v347_v13 = vld [vmem:[#allocation5 + $0x118] sm:$0xff]  ;;  %vm2881_vm1 = vmpackc.low %vm529_vm0, %vm529_vm0 }
  0x7c   : > { %2146 = vmatpush1.bf16.msra.mxu0 %v2145_v27  ;;  %2164 = vmatprep.subr.bf16.mxu1 %v2163_v56  ;;  %v2179_v11 = vpack.c.bf16 %v341_v6, %v338_v5  ;;  %v2183_v18 = vpack.c.bf16 %v347_v13, %v344_v12  ;;  %v350_v20 = vld [vmem:[#allocation5 + $0x130] sm:$0xff]  ;;  %v353_v21 = vld [vmem:[#allocation5 + $0x148] sm:$0xff]  ;;  %v356_v25 = vld [vmem:[#allocation5 + $0x160] sm:$0xff] }
  0x7d   : > { %2148 = vmatprep.subr.bf16.mxu0 %v2147_v28  ;;  %2166 = vmatpush3.bf16.msra.mxu1 %v2163_v56  ;;  %v2187_v24 = vpack.c.bf16 %v353_v21, %v350_v20  ;;  %v359_v27 = vld [vmem:[#allocation5 + $0x178] sm:$0xff] }
  0x7e   : > { %2168 = vmatprep.subr.bf16.mxu1 %v2167_v58  ;;  %v2191_v28 = vpack.c.bf16 %v359_v27, %v356_v25 }
  0x80   : > { %2150 = vmatpush1.bf16.msra.mxu0 %v2149_v33 }
  0x81   : > { %2152 = vmatprep.subr.bf16.mxu0 %v2151_v34  ;;  %2170 = vmatpush3.bf16.msra.mxu1 %v2167_v58 }
  0x82   : > { %2172 = vmatprep.subr.bf16.mxu1 %v2171_v63 }
  0x84   : > { %2154 = vmatpush1.bf16.msra.mxu0 %v2153_v39 }
  0x85   : > { %2156 = vmatprep.subr.bf16.mxu0 %v2155_v40  ;;  %2174 = vmatpush3.bf16.msra.mxu1 %v2171_v63 }
  0x88   : > { %2158 = vmatpush1.bf16.msra.mxu0 %v2157_v45 }
  0x89   : > { %2160 = vmatprep.subr.bf16.mxu0 %v2159_v46 }
  0x8c   : > { %2162 = vmatpush1.bf16.msra.mxu0 %v2161_v49 }
  0x8f   : > { %442 = vmatmul.mubr.f32.vlgmr.msra.gmra.mrb[0].mxu0 %v2853_v26 }
  0x90   : > { %447 = vmatprep.mubr.f32.mxu0 %v2614_v0  ;;  %v332_v0 = vld [vmem:[#allocation5 + $0xa0] sm:$0xff] }
  0x91   : > { %v2175_v4 = vpack.c.bf16 %v335_v1, %v332_v0 }
  0x93   : > { %448 = vmatmul.mubr.f32.gmra.mrb[2].mxu0 %v2859_v50  ;;  %2176 = vmatprep.subr.bf16.mxu1 %v2175_v4 }
  0x94   : > { %2178 = vmatpush3.bf16.msra.mxu1 %v2175_v4 }
  0x95   : > { %2180 = vmatprep.subr.bf16.mxu1 %v2179_v11 }
  0x98   : > { %2182 = vmatpush3.bf16.msra.mxu1 %v2179_v11 }
  0x99   : > { %2184 = vmatprep.subr.bf16.mxu1 %v2183_v18 }
  0x9c   : > { %2186 = vmatpush3.bf16.msra.mxu1 %v2183_v18 }
  0x9d   : > { %2188 = vmatprep.subr.bf16.mxu1 %v2187_v24 }
  0xa0   : > { %2190 = vmatpush3.bf16.msra.mxu1 %v2187_v24 }
  0xa1   : > { %2192 = vmatprep.subr.bf16.mxu1 %v2191_v28 }
  0xa4   : > { %2194 = vmatpush3.bf16.msra.mxu1 %v2191_v28 }
  0xa7   : > { %2029 = vmatmul.mubr.f32.vlgmr.msra.gmra.mrb[0].mxu1 %v2859_v50 }
 0x162   : > { %v443_v7 = vpop.f32.mrb[0].mxu0 }
 0x163   : > { %v2872_v8 = vadd.f32 %v443_v7, %v365_v2  ;;  %v445_v9 = vpop.f32.mrb[1].mxu0 }
 0x164   : > { %v446_v16 = vadd.f32 %v445_v9, %v369_v10 }
 0x165   : > { %727 = vrot.lane.b32.xlu1 %v2872_v8, %s2615_s17  ;;  %2035 = vmatprep.mubr.msk.f32.mxu0 %vm529_vm0, %v2872_v8 }
 0x166   : > { %v449_v14 = vpop.f32.mrb[2].mxu0 }
 0x167   : > { %v451_v15 = vpop.f32.mrb[3].mxu0  ;;  %v2891_v29 = vadd.f32 %v449_v14, %v365_v2 }
 0x168   : > { %v452_v17 = vadd.f32 %v451_v15, %v369_v10 }
 0x16a   : > { %v2195_v22 = vpack.c.bf16 %v452_v17, %v446_v16  ;;  %v2885_v23 = vpack.i.bf16 %v452_v17, %v446_v16 }
 0x16c   : > { %2197 = vmatprep.subr.msk.bf16.mxu0 %vm2881_vm1, %v2195_v22 }
 0x16d   : > { %2200 = vmatpush3.bf16.xpose.msk.msra.mxu0 %vm2881_vm1, %v2195_v22 }
 0x174   : > { %2036 = vmatmul.mubr.msk.f32.vlgmr.msra.gmra.mrb[4].mxu0 %vm529_vm0, %v2891_v29 }
 0x17a   : > { %v2030_v38 = vpop.f32.mrb[0].mxu1 }
 0x17b   : > { %v520_v39 = vpop.f32.mrb[1].mxu1  ;;  %v526_v40 = vadd.f32 %v2030_v38, %v373_v37 }
 0x17c   : > { %v521_v41 = vadd.f32 %v520_v39, %v373_v37 }
 0x17e   : > { %v2201_v42 = vpack.c.bf16 %v526_v40, %v521_v41  ;;  %v2920_v11 = vpack.i.bf16 %v526_v40, %v521_v41 }
 0x180   : > { %2202 = vmatprep.subr.bf16.mxu1 %v2201_v42 }
 0x181   : > { %2204 = vmatpush3.bf16.msra.mxu1 %v2201_v42 }
 0x1d7   : > { %v728_v58 = vpop.permute.xlu1 %727 }
 0x247   : > { %v2037_v30 = vpop.f32.mrb[4].mxu0 }
 0x248   : > { %v608_v31 = vpop.f32.mrb[5].mxu0  ;;  %v618_v33 = vmul.f32 0.17677669, %v2037_v30  ;;  %v932_v30 = vld [vmem:[#allocation7 + $0x20] sm:$0xff] }
 0x249   : > { %v617_v32 = vmul.f32 0.17677669, %v608_v31  ;;  %v933_v31 = vld [vmem:[#allocation7 + $0x28] sm:$0xff] }
 0x24a   : > { %v623_v35 = vsel %vm619_vm2, %v618_v33, -inf }
 0x24b   : > { %v620_v34 = vsel %vm619_vm2, %v617_v32, -inf }
 0x24c   : > { %621 = vmax.xlane.f32.xlu0 %v620_v34  ;;  %v935_v34 = vld [vmem:[#allocation7 + $0x38] sm:$0xff] }
 0x250   : > { %624 = vmax.xlane.f32.xlu0 %v623_v35 }
 0x266   : > { %2356 = vrot.lane.b32.xlu0 %v2885_v23, %s2615_s17 }
 0x2d9   : > { %v622_v43 = vpop.xlane.xlu0 %621 }
 0x2da   : > { %v626_v44 = vsub.f32 %v617_v32, %v622_v43  ;;  %v934_v32 = vld [vmem:[#allocation7 + $0x30] sm:$0xff] }
 0x2db   : > { %v2219_v35 = vpack.c.bf16 %v935_v34, %v934_v32 }
 0x2dc   : > { %v628_v47 = vmul.f32 1.442695, %v626_v44 }
 0x2dd   : > { %v625_v45 = vpop.xlane.xlu0 %624 }
 0x2de   : > { %v627_v46 = vsub.f32 %v618_v33, %v625_v45  ;;  %v2215_v33 = vpack.c.bf16 %v933_v31, %v932_v30 }
 0x2e0   : > { %v630_v48 = vmul.f32 1.442695, %v627_v46  ;;  %2216 = vmatprep.subr.bf16.mxu0 %v2215_v33 }
 0x2e1   : > { %v2357_v49 = vpop.permute.xlu0 %2356  ;;  %2218 = vmatpush3.bf16.msra.mxu0 %v2215_v33 }
 0x2e2   : > { %2385 = vpow2.f32 %v630_v48  ;;  %v2359_v51 = vunpack.i.h.bf16 %v2357_v49  ;;  %v2358_v52 = vunpack.i.l.bf16 %v2357_v49  ;;  %2220 = vmatprep.subr.bf16.mxu0 %v2219_v35  ;;  %v723_v48 = vld [vmem:[#allocation7] sm:$0xff]  ;;  %v724_v49 = vld [vmem:[#allocation7 + $0x8] sm:$0xff] }
 0x2e3   : > { %2387 = vpow2.f32 %v628_v47 }
 0x2e4   : > { %v2205_v53 = vpack.c.bf16 %v2359_v51, %v2358_v52  ;;  %v2223_v51 = vpack.c.bf16 %v724_v49, %v723_v48  ;;  %v725_v52 = vld [vmem:[#allocation7 + $0x10] sm:$0xff] }
 0x2e5   : > { %2222 = vmatpush3.bf16.msra.mxu0 %v2219_v35 }
 0x2e6   : > { %2207 = vmatprep.subr.msk.bf16.mxu1 %vm2881_vm1, %v2205_v53  ;;  %2224 = vmatprep.subr.bf16.mxu0 %v2223_v51 }
 0x2ec   : > { %v2386_v54 = vpop.eup %2385 }
 0x2ed   : > { %v635_v55 = vsel %vm619_vm2, %v2386_v54, 0.0  ;;  %v2388_v56 = vpop.eup %2387 }
 0x2ee   : > { %636 = vadd.xlane.f32.xlu1 %v635_v55  ;;  %v632_v57 = vsel %vm619_vm2, %v2388_v56, 0.0 }
 0x2f2   : > { %633 = vadd.xlane.f32.xlu1 %v632_v57 }
 0x303   : > { %729 = vrot.lane.b32.xlu1 %v2891_v29, %s2615_s17 }
 0x37b   : > { %v637_v59 = vpop.xlane.xlu1 %636 }
 0x37c   : > { %2389 = vrcp.f32 %v637_v59 }
 0x37f   : > { %v634_v60 = vpop.xlane.xlu1 %633 }
 0x380   : > { %2391 = vrcp.f32 %v634_v60 }
 0x383   : > { %v730_v1 = vpop.permute.xlu1 %729 }
 0x386   : > { %v2390_v61 = vpop.eup %2389 }
 0x387   : > { %v641_v0 = vmul.f32 %v2390_v61, %v2386_v54 }
 0x38a   : > { %v2392_v62 = vpop.eup %2391 }
 0x38b   : > { %v640_v63 = vmul.f32 %v2392_v62, %v2388_v56 }
 0x38d   : > { %2042 = vmatprep.mubr.msk.f32.mxu1 %vm619_vm2, %v640_v63 }
 0x38e   : > { %2043 = vmatmul.mubr.msk.f32.vlgmr.msra.gmra.mrb[2].mxu1 %vm619_vm2, %v641_v0 }
 0x38f   : > { %2210 = vmatpush3.bf16.xpose.msk.msra.mxu1 %vm2881_vm1, %v2205_v53  ;;  %2049 = vmatprep.mubr.msk.f32.mxu1 %vm529_vm0, %v728_v58  ;;  %v726_v53 = vld [vmem:[#allocation7 + $0x18] sm:$0xff] }
 0x390   : > { %v2227_v56 = vpack.c.bf16 %v726_v53, %v725_v52 }
 0x396   : > { %2050 = vmatmul.mubr.msk.f32.vlgmr.msra.gmra.mrb[4].mxu1 %vm529_vm0, %v730_v1 }
 0x461   : > { %v2914_v2 = vpop.f32.mrb[2].mxu1 }
 0x462   : > { %v2916_v3 = vpop.f32.mrb[3].mxu1 }
 0x469   : > { %v2051_v4 = vpop.f32.mrb[4].mxu1 }
 0x46a   : > { %v819_v5 = vmul.f32 0.17677669, %v2051_v4  ;;  %v809_v6 = vpop.f32.mrb[5].mxu1 }
 0x46b   : > { %v818_v7 = vmul.f32 0.17677669, %v809_v6 }
 0x46c   : > { %v823_v9 = vsel %vm619_vm2, %v819_v5, -inf }
 0x46d   : > { %824 = vmax.xlane.f32.xlu0 %v823_v9  ;;  %v820_v10 = vsel %vm619_vm2, %v818_v7, -inf }
 0x46e   : > { %821 = vmax.xlane.f32.xlu1 %v820_v10 }
 0x47f   : > { %2361 = vrot.lane.b32.xlu1 %v2920_v11, %s2615_s17  ;;  %s2507_s17 = sshll.u32 %s2618_s29, 4  ;;  %s2508_s17 = int_to_ptr.vmem [resolvable:$false] %s2507_s17 }
 0x480   : > { %p2510_p5 = scmp.lt.s32.totalorder %s2985_s30, %s2508_s17 }
 0x483   : > { %1098 = vrot.lane.b32.xlu1 %v2872_v8, %s2616_s18 }
 0x487   : > { %1100 = vrot.lane.b32.xlu1 %v2891_v29, %s2616_s18 }
 0x4fa   : > { %v825_v12 = vpop.xlane.xlu0 %824 }
 0x4fb   : > { %v827_v13 = vsub.f32 %v819_v5, %v825_v12  ;;  %v822_v14 = vpop.xlane.xlu1 %821 }
 0x4fc   : > { %v826_v15 = vsub.f32 %v818_v7, %v822_v14  ;;  %v1302_v14 = vld [vmem:[#allocation7 + $0x48] sm:$0xff] }
 0x4fd   : > { %v830_v16 = vmul.f32 1.442695, %v827_v13  ;;  %v1301_v13 = vld [vmem:[#allocation7 + $0x40] sm:$0xff] }
 0x4fe   : > { %v828_v17 = vmul.f32 1.442695, %v826_v15  ;;  %v1303_v15 = vld [vmem:[#allocation7 + $0x50] sm:$0xff] }
 0x4ff   : > { %2393 = vpow2.f32 %v830_v16  ;;  %v2362_v18 = vpop.permute.xlu1 %2361  ;;  %v2241_v16 = vpack.c.bf16 %v1302_v14, %v1301_v13 }
 0x500   : > { %v2364_v20 = vunpack.i.h.bf16 %v2362_v18  ;;  %v2363_v21 = vunpack.i.l.bf16 %v2362_v18  ;;  %2395 = vpow2.f32 %v828_v17  ;;  %v1304_v17 = vld [vmem:[#allocation7 + $0x58] sm:$0xff] }
 0x501   : > { %v2245_v18 = vpack.c.bf16 %v1304_v17, %v1303_v15 }
 0x502   : > { %v2211_v22 = vpack.c.bf16 %v2364_v20, %v2363_v21 }
 0x503   : > { %v1099_v46 = vpop.permute.xlu1 %1098 }
 0x504   : > { %2212 = vmatprep.subr.bf16.mxu1 %v2211_v22 }
 0x505   : > { %2214 = vmatpush3.bf16.msra.mxu1 %v2211_v22 }
 0x507   : > { %v1101_v47 = vpop.permute.xlu1 %1100 }
 0x509   : > { %v2394_v24 = vpop.eup %2393 }
 0x50a   : > { %v835_v25 = vsel %vm619_vm2, %v2394_v24, 0.0  ;;  %v2396_v27 = vpop.eup %2395 }
 0x50b   : > { %836 = vadd.xlane.f32.xlu0 %v835_v25  ;;  %v832_v28 = vsel %vm619_vm2, %v2396_v27, 0.0 }
 0x50f   : > { %833 = vadd.xlane.f32.xlu0 %v832_v28 }
 0x525   : > { %2366 = vrot.lane.b32.xlu0 %v2885_v23, %s2616_s18 }
 0x598   : > { %v837_v36 = vpop.xlane.xlu0 %836 }
 0x599   : > { %2397 = vrcp.f32 %v837_v36 }
 0x59c   : > { %v834_v37 = vpop.xlane.xlu0 %833 }
 0x59d   : > { %2399 = vrcp.f32 %v834_v37 }
 0x5a0   : > { %v2367_v38 = vpop.permute.xlu0 %2366 }
 0x5a1   : > { %v2369_v39 = vunpack.i.h.bf16 %v2367_v38  ;;  %v2368_v40 = vunpack.i.l.bf16 %v2367_v38 }
 0x5a3   : > { %v2231_v41 = vpack.c.bf16 %v2369_v39, %v2368_v40  ;;  %v2398_v42 = vpop.eup %2397 }
 0x5a4   : > { %v841_v45 = vmul.f32 %v2398_v42, %v2394_v24 }
 0x5a5   : > { %2233 = vmatprep.subr.msk.bf16.mxu1 %vm2881_vm1, %v2231_v41 }
 0x5a7   : > { %v2400_v43 = vpop.eup %2399 }
 0x5a8   : > { %v840_v44 = vmul.f32 %v2400_v43, %v2396_v27 }
 0x5aa   : > { %2056 = vmatprep.mubr.msk.f32.mxu1 %vm619_vm2, %v840_v44 }
 0x5ab   : > { %2057 = vmatmul.mubr.msk.f32.vlgmr.msra.gmra.mrb[6].mxu1 %vm619_vm2, %v841_v45 }
 0x5ac   : > { %2236 = vmatpush3.bf16.xpose.msk.msra.mxu1 %vm2881_vm1, %v2231_v41  ;;  %2085 = vmatprep.mubr.msk.f32.mxu1 %vm529_vm0, %v1099_v46 }
 0x5b3   : > { %2086 = vmatmul.mubr.msk.f32.vlgmr.msra.gmra.mrb[8].mxu1 %vm529_vm0, %v1101_v47 }
 0x67e   : > { %v2058_v54 = vpop.f32.mrb[6].mxu1 }
 0x67f   : > { %v922_v55 = vpop.f32.mrb[7].mxu1 }
 0x680   : > { %2067 = vmatprep.mubr.msk.f32.mxu0 %vm529_vm0, %v922_v55  ;;  %v1591_v55 = vld [vmem:[#allocation7 + $0x60] sm:$0xff] }
 0x681   : > { %2068 = vmatmul.mubr.msk.f32.vlgmr.msra.gmra.mrb[6].mxu0 %vm529_vm0, %v2058_v54 }
 0x682   : > { %2226 = vmatpush3.bf16.msra.mxu0 %v2223_v51  ;;  %2078 = vmatprep.mubr.msk.f32.mxu0 %vm529_vm0, %v2916_v3 }
 0x683   : > { %2228 = vmatprep.subr.bf16.mxu0 %v2227_v56 }
 0x686   : > { %v2087_v57 = vpop.f32.mrb[8].mxu1  ;;  %2230 = vmatpush3.bf16.msra.mxu0 %v2227_v56  ;;  %v1592_v56 = vld [vmem:[#allocation7 + $0x68] sm:$0xff] }
 0x687   : > { %v1190_v58 = vmul.f32 0.17677669, %v2087_v57  ;;  %v1180_v59 = vpop.f32.mrb[9].mxu1  ;;  %2242 = vmatprep.subr.bf16.mxu0 %v2241_v16  ;;  %v1593_v57 = vld [vmem:[#allocation7 + $0x70] sm:$0xff] }
 0x688   : > { %v1189_v60 = vmul.f32 0.17677669, %v1180_v59  ;;  %v1594_v59 = vld [vmem:[#allocation7 + $0x78] sm:$0xff] }
 0x689   : > { %v1194_v61 = vsel %vm619_vm2, %v1190_v58, -inf  ;;  %2079 = vmatmul.mubr.msk.f32.vlgmr.msra.gmra.mrb[6].mxu0 %vm529_vm0, %v2914_v2 }
 0x68a   : > { %1195 = vmax.xlane.f32.xlu0 %v1194_v61  ;;  %v1191_v62 = vsel %vm619_vm2, %v1189_v60, -inf  ;;  %2244 = vmatpush3.bf16.msra.mxu0 %v2241_v16 }
 0x68b   : > { %1192 = vmax.xlane.f32.xlu1 %v1191_v62  ;;  %2246 = vmatprep.subr.bf16.mxu0 %v2245_v18 }
 0x68e   : > { %2248 = vmatpush3.bf16.msra.mxu0 %v2245_v18 }
 0x69c   : > { %2371 = vrot.lane.b32.xlu1 %v2920_v11, %s2616_s18  ;;  %s2509_s18 = scalar_lea.vmem %s2508_s17, 512 }
 0x69d   : > { %p2511_p9 = scmp.lt.s32.totalorder %s2509_s18, %s2503_s27 }
 0x69f   : > { %p2512_p12 = por %p2511_p9, %p2510_p5 }
 0x6a0   : > { %1388 = vrot.lane.b32.xlu1 %v2872_v8, %s2617_s16 }
 0x6a1   : > { %p2513_p2 = pnand %p2512_p12, %p2506_p3 }
 0x6a4   : > { %1390 = vrot.lane.b32.xlu1 %v2891_v29, %s2617_s16 }
 0x717   : > { %v1196_v63 = vpop.xlane.xlu0 %1195 }
 0x718   : > { %v1198_v0 = vsub.f32 %v1190_v58, %v1196_v63  ;;  %v1193_v1 = vpop.xlane.xlu1 %1192  ;;  %v2259_v58 = vpack.c.bf16 %v1592_v56, %v1591_v55 }
 0x719   : > { %v1197_v3 = vsub.f32 %v1189_v60, %v1193_v1  ;;  %v2263_v60 = vpack.c.bf16 %v1594_v59, %v1593_v57 }
 0x71a   : > { %v1201_v4 = vmul.f32 1.442695, %v1198_v0  ;;  %2260 = vmatprep.subr.bf16.mxu0 %v2259_v58 }
 0x71b   : > { %v1199_v2 = vmul.f32 1.442695, %v1197_v3 }
 0x71c   : > { %2401 = vpow2.f32 %v1201_v4  ;;  %v2372_v5 = vpop.permute.xlu1 %2371 }
 0x71d   : > { %v2374_v6 = vunpack.i.h.bf16 %v2372_v5  ;;  %v2373_v7 = vunpack.i.l.bf16 %v2372_v5  ;;  %2403 = vpow2.f32 %v1199_v2 }
 0x71f   : > { %v2237_v9 = vpack.c.bf16 %v2374_v6, %v2373_v7  ;;  %v1912_v6 = vld [vmem:[%s3070_s4] ss:$0 sm:$0xff] }
 0x720   : > { %v1389_v32 = vpop.permute.xlu1 %1388 }
 0x721   : > { %2238 = vmatprep.subr.bf16.mxu1 %v2237_v9 }
 0x722   : > { %2240 = vmatpush3.bf16.msra.mxu1 %v2237_v9 }
 0x724   : > { %v1391_v33 = vpop.permute.xlu1 %1390 }
 0x726   : > { %v2402_v10 = vpop.eup %2401 }
 0x727   : > { %v1206_v8 = vsel %vm619_vm2, %v2402_v10, 0.0  ;;  %v2404_v12 = vpop.eup %2403 }
 0x728   : > { %1207 = vadd.xlane.f32.xlu0 %v1206_v8  ;;  %v1203_v29 = vsel %vm619_vm2, %v2404_v12, 0.0 }
 0x72c   : > { %1204 = vadd.xlane.f32.xlu0 %v1203_v29 }
 0x742   : > { %2376 = vrot.lane.b32.xlu0 %v2885_v23, %s2617_s16 }
 0x7b5   : > { %v1208_v20 = vpop.xlane.xlu0 %1207 }
 0x7b6   : > { %2405 = vrcp.f32 %v1208_v20 }
 0x7b9   : > { %v1205_v21 = vpop.xlane.xlu0 %1204 }
 0x7ba   : > { %2407 = vrcp.f32 %v1205_v21 }
 0x7bd   : > { %v2377_v22 = vpop.permute.xlu0 %2376 }
 0x7be   : > { %v2379_v24 = vunpack.i.h.bf16 %v2377_v22  ;;  %v2378_v25 = vunpack.i.l.bf16 %v2377_v22 }
 0x7c0   : > { %v2249_v27 = vpack.c.bf16 %v2379_v24, %v2378_v25  ;;  %v2406_v23 = vpop.eup %2405 }
 0x7c1   : > { %v1212_v31 = vmul.f32 %v2406_v23, %v2402_v10 }
 0x7c2   : > { %2251 = vmatprep.subr.msk.bf16.mxu1 %vm2881_vm1, %v2249_v27 }
 0x7c4   : > { %v2408_v28 = vpop.eup %2407 }
 0x7c5   : > { %v1211_v30 = vmul.f32 %v2408_v28, %v2404_v12 }
 0x7c7   : > { %2092 = vmatprep.mubr.msk.f32.mxu1 %vm619_vm2, %v1211_v30 }
 0x7c8   : > { %2093 = vmatmul.mubr.msk.f32.vlgmr.msra.gmra.mrb[10].mxu1 %vm619_vm2, %v1212_v31 }
 0x7c9   : > { %2254 = vmatpush3.bf16.xpose.msk.msra.mxu1 %vm2881_vm1, %v2249_v27  ;;  %2110 = vmatprep.mubr.msk.f32.mxu1 %vm529_vm0, %v1389_v32 }
 0x7d0   : > { %2111 = vmatmul.mubr.msk.f32.vlgmr.msra.gmra.mrb[12].mxu1 %vm529_vm0, %v1391_v33 }
 0x89b   : > { %v2094_v34 = vpop.f32.mrb[10].mxu1 }
 0x89c   : > { %v1291_v35 = vpop.f32.mrb[11].mxu1 }
 0x89d   : > { %2103 = vmatprep.mubr.msk.f32.mxu0 %vm529_vm0, %v1291_v35 }
 0x89e   : > { %2104 = vmatmul.mubr.msk.f32.vlgmr.msra.gmra.mrb[6].mxu0 %vm529_vm0, %v2094_v34 }
 0x89f   : > { %2262 = vmatpush3.bf16.msra.mxu0 %v2259_v58 }
 0x8a0   : > { %2264 = vmatprep.subr.bf16.mxu0 %v2263_v60 }
 0x8a3   : > { %v2112_v36 = vpop.f32.mrb[12].mxu1  ;;  %2266 = vmatpush3.bf16.msra.mxu0 %v2263_v60 }
 0x8a4   : > { %v1480_v37 = vmul.f32 0.17677669, %v2112_v36  ;;  %v1470_v38 = vpop.f32.mrb[13].mxu1 }
 0x8a5   : > { %v1479_v39 = vmul.f32 0.17677669, %v1470_v38 }
 0x8a6   : > { %v1484_v40 = vsel %vm619_vm2, %v1480_v37, -inf }
 0x8a7   : > { %1485 = vmax.xlane.f32.xlu0 %v1484_v40  ;;  %v1481_v19 = vsel %vm619_vm2, %v1479_v39, -inf }
 0x8a8   : > { %1482 = vmax.xlane.f32.xlu1 %v1481_v19 }
 0x8b9   : > { %2381 = vrot.lane.b32.xlu1 %v2920_v11, %s2617_s16 }
 0x934   : > { %v1486_v41 = vpop.xlane.xlu0 %1485 }
 0x935   : > { %v1488_v42 = vsub.f32 %v1480_v37, %v1486_v41  ;;  %v1483_v43 = vpop.xlane.xlu1 %1482 }
 0x936   : > { %v1487_v44 = vsub.f32 %v1479_v39, %v1483_v43 }
 0x937   : > { %v1491_v45 = vmul.f32 1.442695, %v1488_v42 }
 0x938   : > { %v1489_v46 = vmul.f32 1.442695, %v1487_v44 }
 0x939   : > { %v2382_v47 = vpop.permute.xlu1 %2381 }
 0x93a   : > { %2409 = vpow2.f32 %v1489_v46  ;;  %v2384_v48 = vunpack.i.h.bf16 %v2382_v47  ;;  %v2383_v49 = vunpack.i.l.bf16 %v2382_v47 }
 0x93b   : > { %2411 = vpow2.f32 %v1491_v45 }
 0x93c   : > { %v2255_v51 = vpack.c.bf16 %v2384_v48, %v2383_v49 }
 0x93e   : > { %2256 = vmatprep.subr.bf16.mxu1 %v2255_v51 }
 0x93f   : > { %2258 = vmatpush3.bf16.msra.mxu1 %v2255_v51 }
 0x944   : > { %v2410_v52 = vpop.eup %2409 }
 0x945   : > { %v1493_v53 = vsel %vm619_vm2, %v2410_v52, 0.0  ;;  %v2412_v54 = vpop.eup %2411 }
 0x946   : > { %1494 = vadd.xlane.f32.xlu0 %v1493_v53  ;;  %v1496_v11 = vsel %vm619_vm2, %v2412_v54, 0.0 }
 0x94a   : > { %1497 = vadd.xlane.f32.xlu0 %v1496_v11 }
 0x9d3   : > { %v1495_v61 = vpop.xlane.xlu0 %1494 }
 0x9d4   : > { %2413 = vrcp.f32 %v1495_v61 }
 0x9d7   : > { %v1498_v62 = vpop.xlane.xlu0 %1497 }
 0x9d8   : > { %2415 = vrcp.f32 %v1498_v62 }
 0x9de   : > { %v2414_v63 = vpop.eup %2413 }
 0x9df   : > { %v1501_v0 = vmul.f32 %v2414_v63, %v2410_v52 }
 0x9e1   : > { %2117 = vmatprep.mubr.msk.f32.mxu1 %vm619_vm2, %v1501_v0 }
 0x9e2   : > { %v2416_v1 = vpop.eup %2415 }
 0x9e3   : > { %v1502_v3 = vmul.f32 %v2416_v1, %v2412_v54 }
 0x9e5   : > { %2118 = vmatmul.mubr.msk.f32.vlgmr.msra.gmra.mrb[14].mxu1 %vm619_vm2, %v1502_v3 }
 0xab8   : > { %v2119_v4 = vpop.f32.mrb[14].mxu1 }
 0xab9   : > { %v1581_v2 = vpop.f32.mrb[15].mxu1 }
 0xaba   : > { %2128 = vmatprep.mubr.msk.f32.mxu0 %vm529_vm0, %v1581_v2 }
 0xabb   : > { %2129 = vmatmul.mubr.msk.f32.vlgmr.msra.gmra.mrb[6].mxu0 %vm529_vm0, %v2119_v4 }
 0xb8e   : > { %v2130_v5 = vpop.f32.mrb[6].mxu0 }
 0xb8f   : > { %v1679_v7 = vadd.f32 %v2130_v5, %v2859_v50  ;;  %v1667_v9 = vpop.f32.mrb[7].mxu0 }
 0xb90   : > { %v1678_v10 = vadd.f32 %v1667_v9, %v2853_v26 }
 0xb91   : > { %v1688_v8 = vadd.f32 %v1912_v6, %v1679_v7 }
 0xb92   : > { %v1687_v12 = vadd.f32 %v1912_v6, %v1678_v10 }
 0xb93   : > { %1690 = vst [vmem:[%s302_s19 + $0x8] sm:$0xff] %v1688_v8  ;;  %v1699_v29 = vmul.f32 %v1688_v8, %v1688_v8 }
 0xb94   : > { %1689 = vst [vmem:[%s302_s19] sm:$0xff] %v1687_v12  ;;  %v1691_v13 = vadd.f32 %v1688_v8, %v1687_v12  ;;  %v1698_v50 = vmul.f32 %v1687_v12, %v1687_v12 }
 0xb95   : > { %2516 = shalt.err (!%p2513_p2)
}
 0xb96   : > { %s2517_s16 = scalar_lea.hbm %s2991_s7, 256  ;;  %s2521_s13 = scalar_lea.hbm %s3071_s5, 512 }
 0xb97   : > { %p2518_p13 = scmp.ne.s32.totalorder %s2991_s7, %s2517_s16  ;;  %p2522_p4 = scmp.lt.u32.totalorder %s2991_s7, %s3071_s5 }
 0xb98   : > { %p2523_p7 = scmp.lt.u32.totalorder %s2521_s13, %s2517_s16  ;;  %p2525_p11 = scmp.lt.u32.totalorder %s2517_s16, %s2991_s7 }
 0xb99   : > { %p2519_p6 = pnand %p2518_p13, %p3088_p0 }
 0xb9a   : > { %p2524_p8 = por %p2523_p7, %p2522_p4 }
 0xb9b   : > { %p2520_p10 = pneg %p2519_p6 }
 0xb9c   : > { %p2526_p1 = por %p2525_p11, %p2524_p8 }
 0xb9e   : > { %p2527_p3 = pnand %p2526_p1, %p2520_p10 }
 0xba0   : > { %2530 = shalt.err (!%p2527_p3)
}
 0xba1   : > { %s2619_s14 = smov 128   ;;  %s2620_s27 = smov 8   ;;  %v1692_v26 = vrot.slane %v1691_v13, 4  ;;  %v1700_v14 = vadd.f32 %v1699_v29, %v1698_v50  ;;  %vm1707_vm3 = vcmask 1040384  }
 0xba2   : > { %2283 = dma.vmem_to_hbm [thread:$0]  (%p3088_p0), %s2985_s30, 256, %s2991_s7, %s1711_s20, %s2619_s14, %s2619_s14, %s2620_s27  }
 0xba3   : > { %v1693_v15 = vadd.f32 %v1692_v26, %v1691_v13  ;;  %v1701_v16 = vrot.slane %v1700_v14, 4  ;;  %s1879_s29 = sshll.u32 %s2835_s9, 1  ;;  %s1917_s17 = sshll.u32 %s2678_s25, 5 }
 0xba4   : > { %s309_s18 = scalar_lea.vmem [#allocation9], %s1879_s29  ;;  %s3022_s20 = scalar_lea.hbm %s3072_s6, %s1917_s17 }
 0xba5   : > { %v1694_v17 = vrot.slane %v1693_v15, 2  ;;  %v1702_v18 = vadd.f32 %v1701_v16, %v1700_v14  ;;  %s1745_s16 = sshll.u32 %s309_s18, 4  ;;  %s1716_s19 = scalar_lea.sflag [#allocation10], %s2835_s9  ;;  %s3024_s16 = int_to_ptr.vmem [resolvable:$true] %s1745_s16 }
 0xba6   : > { %s2531_s12 = scalar_lea.vmem %s3024_s16, 32  ;;  %s2621_s25 = smov [#allocation9]  }
 0xba7   : > { %v1695_v20 = vadd.f32 %v1694_v17, %v1693_v15  ;;  %v1703_v21 = vrot.slane %v1702_v18, 2  ;;  %p2532_p5 = scmp.ne.s32.totalorder %s3024_s16, %s2531_s12  ;;  %s2535_s13 = sshll.u32 %s2621_s25, 4  ;;  %s2536_s13 = int_to_ptr.vmem [resolvable:$false] %s2535_s13 }
 0xba8   : > { %s2537_s10 = scalar_lea.vmem %s2536_s13, 64  ;;  %p2538_p2 = scmp.lt.s32.totalorder %s3024_s16, %s2536_s13 }
 0xba9   : > { %v1696_v22 = vrot.slane %v1695_v20, 1  ;;  %v1704_v24 = vadd.f32 %v1703_v21, %v1702_v18  ;;  %p2533_p9 = pnand %p2532_p5, %p3088_p0  ;;  %p2539_p13 = scmp.lt.s32.totalorder %s2537_s10, %s2531_s12 }
 0xbab   : > { %v1705_v25 = vrot.slane %v1704_v24, 1  ;;  %v1697_v27 = vadd.f32 %v1696_v22, %v1695_v20  ;;  %p2534_p12 = pneg %p2533_p9  ;;  %p2540_p6 = por %p2539_p13, %p2538_p2 }
 0xbad   : > { %v1706_v23 = vadd.f32 %v1705_v25, %v1704_v24  ;;  %p2541_p10 = pnand %p2540_p6, %p2534_p12 }
 0xbaf   : > { %v1708_v28 = vsel %vm1707_vm3, %v1697_v27, %v1706_v23 }
 0xbb0   : > { %1709 = vst [vmem:[%s309_s18] sm:$0x3] %v1708_v28 }
 0xbb1   : > { %2544 = shalt.err (!%p2541_p10)
}
 0xbb2   : > { %s2545_s9 = scalar_lea.hbm %s3022_s20, 32  ;;  %s2549_s27 = scalar_lea.hbm %s3072_s6, 64 }
 0xbb3   : > { %p2546_p4 = scmp.ne.s32.totalorder %s3022_s20, %s2545_s9  ;;  %p2550_p11 = scmp.lt.u32.totalorder %s3022_s20, %s3072_s6 }
 0xbb4   : > { %p2551_p1 = scmp.lt.u32.totalorder %s2549_s27, %s2545_s9  ;;  %p2553_p5 = scmp.lt.u32.totalorder %s2545_s9, %s3022_s20 }
 0xbb5   : > { %p2547_p7 = pnand %p2546_p4, %p3088_p0 }
 0xbb6   : > { %p2552_p3 = por %p2551_p1, %p2550_p11 }
 0xbb7   : > { %p2548_p8 = pneg %p2547_p7 }
 0xbb8   : > { %p2554_p9 = por %p2553_p5, %p2552_p3 }
 0xbba   : > { %p2555_p12 = pnand %p2554_p9, %p2548_p8 }
 0xbbc   : > { %2558 = shalt.err (!%p2555_p12)
}
 0xbbd   : > { %2284 = dma.vmem_to_hbm [thread:$0]  (%p3088_p0), %s3024_s16, 32, %s3022_s20, %s1716_s19  }
 0xbbe PF: > { %s1757_s18 = sand.u32 1, %s2593_s21   ;;  %p3089_p2 = scmp.ne.s32.totalorder %s3077_s28, 0 }
 0xbbf   : > { %p3090_p13 = scmp.ge.s32.totalorder %s2605_s24, 2  ;;  %s1758_s30 = scalar_lea.sflag [#allocation4], %s1757_s18 }
 0xbc1   : > { %p2299_p6 = pnand %p3090_p13, %p3089_p2 }
 0xbc3   : > { %2584 = dma.done.wait (!%p2299_p6), %s1758_s30, 256  }
 0xbc4   : > { %2586 = vsyncadd (!%p2299_p6), %s1758_s30, 4294967040  ;;  %s1767_s7 = scalar_lea.sflag [#allocation10], %s1757_s18 }
 0xbc5   : > { %2588 = dma.done.wait (!%p2299_p6), %s1767_s7, 32  }
 0xbc6   : > { %2590 = vsyncadd (!%p2299_p6), %s1767_s7, 4294967264  ;;  %p24_p0 = scmp.ge.s32.totalorder %s2770_s26, 4   ;;  %s3091_s21 = smov %s2597_s22 }
 0xbc7   : > { %s3092_s22 = smov %s2601_s23  ;;  %s3093_s23 = smov %s2779_s11 }
 0xbc8   : > { %s3094_s24 = smov %s2770_s26  ;;  %26 = sbr.rel (!%p24_p0) target bundleno = 8 (0x8), region = 113 }
 0xbcf   :  { %1772 = vsyncpa [#allocation3], 1 }
 0xbd0   :  { %1774 = vsyncpa [#allocation3 + $0x1], 1 }
 0xbd1   :  { %1775 = vsyncpa [#allocation6], 1 }
 0xbd2   :  { %1776 = vsyncpa [#allocation4], 1 }
 0xbd3   :  { %1778 = vsyncpa [#allocation4 + $0x1], 1 }
 0xbd4   :  { %1779 = vsyncpa [#allocation10], 1 }
 0xbd5   :  { %1781 = vsyncpa [#allocation10 + $0x1], 1 }

</bundles_post_ra>
